<compile_context>
chip_gen: v5e
topology: v5e:2x2
jax: 0.10.0
libtpu: 0.0.40
codegen_flags: <defaults>
</compile_context>

<pallas_src>
import math

import jax
import jax.numpy as jnp
from jax.experimental import pallas as pl
from jax.experimental.pallas import tpu as pltpu

# ---------------- configuration (small, consistent with the module) ----------
N_NODES = 16          # number of graph nodes
PRE_DIM = 15          # node_pre_embedding feature dim
D_IN = PRE_DIM + 1    # +1 for the step feature
D_PAD = 32            # padded selector / extended-table dim inside the kernel
H1 = 32               # hidden_dims1 = [32, 32]
H2 = 32               # hidden_dims2 = [32, 32]  -> embed_dim = 32
H3 = 32               # hidden_dims3 = [32, 32]
LSTM_H = 32           # args.lstm_hidden_dim
EMBED = H2            # == hidden_dims3[-1] (asserted in the module)
B = 2                 # batch (len(actions0))
K = 8                 # fixed neighbor degree of the synthetic graph
DRS = 10.0            # args.delayed_reward_step
ACT_ROWS = 8          # action rows padded to one sublane tile
R_GATHER = ACT_ROWS + B * K   # gathered rows per step (24)
INV_DRS = 1.0 / DRS
INV_SQRT_E = 1.0 / math.sqrt(EMBED)

assert B * K <= LSTM_H, "packed-output lane budget"

# packed weight-slab row offsets (single lane-dense [W_ROWS, 128] f32 slab)
ROW_TW = 0     # rows   0: 32 lanes 0:64   ext-node-table @ [w1a|w2a]
               #              lanes 64:96  w3a.T ; lanes 96:128 w3b.T
ROW_WIH = 32   # rows  32: 64              wih.T  [32,128]
ROW_WHH = 64   # rows  64: 96              whh.T  [32,128]
ROW_W2 = 96    # rows  96:160 lanes 0:64   block-diag(w1b.T, w2b.T)
ROW_B = 160    # rows 160:168              bias rows (see pack_params)
W_ROWS = 168


# ---------------------------- Pallas kernel ----------------------------------
def q1_kernel(d_ref, hc0_ref, w_ref, out_ref, hc_ref):
    """One grid step == one Q1.forward() call; h/c carried in hc_ref scratch."""
    f32 = jnp.float32
    t = pl.program_id(0)
    R = d_ref.shape[0]                      # 24 gathered rows for this step

    @pl.when(t == 0)
    def _():                                # load the initial LSTM state once
        hc_ref[...] = hc0_ref[...]

    dv = d_ref[...]                         # [R, 2]: col0 = node idx, col1 = step/DRS
    idx_f = dv[:, 0:1]
    stp = dv[:, 1:2]

    # --- extended one-hot selector [R, 32]: lanes 0..15 one-hot(node),
    #     lane 16 = step/DRS, lanes 17..31 zero ------------------------------
    lane = jax.lax.broadcasted_iota(jnp.int32, (R, D_PAD), 1)
    sel = (lane.astype(f32) == idx_f).astype(f32) \
        + (lane == N_NODES).astype(f32) * stp

    # --- fused gather + layer-1 of BOTH MLPs: [R,32] @ [32,64] ---------------
    pre1 = (jnp.dot(sel, w_ref[ROW_TW:ROW_TW + D_PAD, 0:2 * H1],
                    preferred_element_type=f32)
            + w_ref[ROW_B:ROW_B + 1, 0:2 * H1])
    a1 = jnp.maximum(pre1, 0.0)
    # --- layer-2 of both MLPs, block-diagonal: [R,64] @ [64,64] --------------
    pre2 = (jnp.dot(a1, w_ref[ROW_W2:ROW_W2 + 2 * H1, 0:2 * H1],
                    preferred_element_type=f32)
            + w_ref[ROW_B + 1:ROW_B + 2, 0:2 * H1])

    lstm_in = pre2[0:B, 0:H1]                       # linears  path (act rows)
    ge = pre2[ACT_ROWS:R, H1:2 * H1]                # linears2 path (nei rows)

    # --- LSTMCell (PyTorch gate order i, f, g, o); 4*H == 128 lanes ----------
    h0 = hc_ref[:, 0:LSTM_H]
    c0 = hc_ref[:, LSTM_H:2 * LSTM_H]
    gates = (jnp.dot(lstm_in, w_ref[ROW_WIH:ROW_WIH + H1, :],
                     preferred_element_type=f32)
             + jnp.dot(h0, w_ref[ROW_WHH:ROW_WHH + LSTM_H, :],
                       preferred_element_type=f32)
             + w_ref[ROW_B + 2:ROW_B + 3, :])       # bih + bhh pre-summed
    sig = jax.nn.sigmoid(gates)                     # full-width EUP push
    th = jnp.tanh(gates)                            # full-width EUP push
    i_g = sig[:, 0:LSTM_H]
    f_g = sig[:, LSTM_H:2 * LSTM_H]
    g_g = th[:, 2 * LSTM_H:3 * LSTM_H]
    o_g = sig[:, 3 * LSTM_H:4 * LSTM_H]
    c_new = f_g * c0 + i_g * g_g
    h_new = o_g * jnp.tanh(c_new)
    hc_ref[...] = jnp.concatenate([h_new, c_new], axis=-1)   # carry to step t+1

    # --- linears3 on the new hidden state -> action embedding ----------------
    h3 = jnp.maximum(
        jnp.dot(h_new, w_ref[ROW_TW:ROW_TW + LSTM_H, 2 * H1:2 * H1 + H3],
                preferred_element_type=f32)
        + w_ref[ROW_B + 3:ROW_B + 4, 0:H3], 0.0)
    act_emb = (jnp.dot(h3, w_ref[ROW_TW:ROW_TW + H3, 2 * H1 + H3:2 * H1 + 2 * H3],
                       preferred_element_type=f32)
               + w_ref[ROW_B + 4:ROW_B + 5, 0:H3])            # [B, E]

    # --- values: act_emb x ge^T on the MXU, kept fully 2-D -------------------
    vals_full = jax.lax.dot_general(
        act_emb, ge, (((1,), (1,)), ((), ())),
        preferred_element_type=f32) * INV_SQRT_E              # [B, B*K]

    # --- single lane-dense packed store: [values|pad | h | c | pad] ----------
    vals_pad = jnp.concatenate(
        [vals_full, jnp.zeros((B, LSTM_H - B * K), f32)], axis=-1)
    out_ref[...] = jnp.concatenate(
        [vals_pad, h_new, c_new, jnp.zeros((B, LSTM_H), f32)], axis=-1)


# ---------------------------- wrapper -----------------------------------------
@jax.jit
def q1_rollout_pallas(actions_seq, nei_seq, steps_seq, h0, c0, w_all):
    """T forward() calls in one pallas_call; h/c threaded inside the kernel.

    actions_seq: [T, B] int32 node ids     nei_seq: [T, B, K] int32 neighbor ids
    steps_seq:   [T, B] f32 step counters  h0, c0:  [B, LSTM_H] f32 initial state
    w_all:       [W_ROWS, 128] f32 packed weight slab (pack_params).
    """
    T = actions_seq.shape[0]

    # per-step selector columns (node index as float + pre-scaled step value)
    idx = jnp.zeros((T, R_GATHER), jnp.float32)
    idx = idx.at[:, :B].set(actions_seq.astype(jnp.float32))
    idx = idx.at[:, ACT_ROWS:].set(nei_seq.reshape(T, B * K).astype(jnp.float32))
    stp = jnp.zeros((T, R_GATHER), jnp.float32)
    stp = stp.at[:, :B].set(steps_seq * INV_DRS)
    stp = stp.at[:, ACT_ROWS:].set(jnp.repeat(steps_seq, K, axis=1) * INV_DRS)
    d = jnp.stack([idx, stp], axis=-1)                        # [T, R, 2]

    hc0 = jnp.concatenate([h0, c0], axis=-1)                  # [B, 64]

    out = pl.pallas_call(
        q1_kernel,
        grid=(T,),
        out_shape=jax.ShapeDtypeStruct((T, B, 4 * LSTM_H), jnp.float32),
        in_specs=[
            pl.BlockSpec((None, R_GATHER, 2), lambda t: (t, 0, 0)),   # per-step
            pl.BlockSpec((B, 2 * LSTM_H), lambda t: (0, 0)),          # hc0 resident
            pl.BlockSpec((W_ROWS, 4 * LSTM_H), lambda t: (0, 0)),     # weights resident
        ],
        out_specs=pl.BlockSpec((None, B, 4 * LSTM_H), lambda t: (t, 0, 0)),
        scratch_shapes=[pltpu.VMEM((B, 2 * LSTM_H), jnp.float32)],    # carried h|c
        compiler_params=pltpu.CompilerParams(
            dimension_semantics=("arbitrary",)),                      # h/c carry
    )(d, hc0, w_all)

    # unpack: lanes [0:B*K)=values (block b at b*K), [32:64)=h, [64:96)=c
    b_idx = jnp.arange(B)
    k_idx = jnp.arange(K)
    values = out[:, b_idx[:, None], b_idx[:, None] * K + k_idx[None, :]]  # [T,B,K]
    h_all = out[:, :, LSTM_H:2 * LSTM_H]                                  # [T,B,32]
    c_all = out[:, :, 2 * LSTM_H:3 * LSTM_H]                              # [T,B,32]
    return values, h_all, c_all


# ---------------------------- parameter init / packing -------------------------
def init_linear(key, fan_in, fan_out):
    k1, k2 = jax.random.split(key)
    bound = 1.0 / math.sqrt(fan_in)
    w = jax.random.uniform(k1, (fan_out, fan_in), jnp.float32, -bound, bound)
    b = jax.random.uniform(k2, (fan_out,), jnp.float32, -bound, bound)
    return w, b


def make_params(key):
    ks = jax.random.split(key, 10)
    w1a, b1a = init_linear(ks[0], D_IN, H1)     # linears:  D_in -> 32 -> 32
    w1b, b1b = init_linear(ks[1], H1, H1)
    w2a, b2a = init_linear(ks[2], D_IN, H2)     # linears2: D_in -> 32 -> 32
    w2b, b2b = init_linear(ks[3], H2, H2)
    w3a, b3a = init_linear(ks[4], LSTM_H, H3)   # linears3: lstm_h -> 32 -> 32
    w3b, b3b = init_linear(ks[5], H3, H3)
    bnd = 1.0 / math.sqrt(LSTM_H)               # LSTMCell(H1, LSTM_H)
    wih = jax.random.uniform(ks[6], (4 * LSTM_H, H1), jnp.float32, -bnd, bnd)
    whh = jax.random.uniform(ks[7], (4 * LSTM_H, LSTM_H), jnp.float32, -bnd, bnd)
    bih = jax.random.uniform(ks[8], (4 * LSTM_H,), jnp.float32, -bnd, bnd)
    bhh = jax.random.uniform(ks[9], (4 * LSTM_H,), jnp.float32, -bnd, bnd)
    return dict(w1a=w1a, b1a=b1a, w1b=w1b, b1b=b1b,
                w2a=w2a, b2a=b2a, w2b=w2b, b2b=b2b,
                w3a=w3a, b3a=b3a, w3b=w3b, b3b=b3b,
                wih=wih, bih=bih, whh=whh, bhh=bhh)


def pack_params(p, npe):
    """Pack everything into ONE lane-dense [W_ROWS, 128] f32 slab."""
    # extended node table: rows 0..15 = npe, row 16 = step unit vector
    tbl = jnp.zeros((D_PAD, D_IN), jnp.float32)
    tbl = tbl.at[:N_NODES, :PRE_DIM].set(npe)
    tbl = tbl.at[N_NODES, PRE_DIM].set(1.0)
    w1_blk = jnp.concatenate([p["w1a"].T, p["w2a"].T], axis=1)   # [16, 64]
    tw = tbl @ w1_blk                                            # [32, 64]

    blk0 = jnp.concatenate([tw, p["w3a"].T, p["w3b"].T], axis=1)  # [32, 128]
    lstm_w = jnp.concatenate([p["wih"].T, p["whh"].T], axis=0)    # [64, 128]

    w2_blk = jnp.zeros((2 * H1, 2 * H1), jnp.float32)             # block-diag
    w2_blk = w2_blk.at[0:H1, 0:H1].set(p["w1b"].T)
    w2_blk = w2_blk.at[H1:2 * H1, H1:2 * H1].set(p["w2b"].T)
    w2_pad = jnp.pad(w2_blk, ((0, 0), (0, 4 * LSTM_H - 2 * H1)))  # [64, 128]

    bias = jnp.zeros((8, 4 * LSTM_H), jnp.float32)
    bias = bias.at[0, 0:2 * H1].set(jnp.concatenate([p["b1a"], p["b2a"]]))
    bias = bias.at[1, 0:2 * H1].set(jnp.concatenate([p["b1b"], p["b2b"]]))
    bias = bias.at[2, :].set(p["bih"] + p["bhh"])                 # pre-summed
    bias = bias.at[3, 0:H3].set(p["b3a"])
    bias = bias.at[4, 0:H3].set(p["b3b"])

    w_all = jnp.concatenate([blk0, lstm_w, w2_pad, bias], axis=0)  # [168, 128]
    assert w_all.shape == (W_ROWS, 4 * LSTM_H)
    return w_all.astype(jnp.float32)


# ---------------------------- pure-JAX reference -------------------------------
def q1_forward_ref(act_pre, nei_pre, h0, c0, p):
    def mlp2(x, wa, ba, wb, bb):
        h = jnp.maximum(x @ wa.T + ba, 0.0)
        return h @ wb.T + bb

    lstm_in = mlp2(act_pre, p["w1a"], p["b1a"], p["w1b"], p["b1b"])
    gates = lstm_in @ p["wih"].T + p["bih"] + h0 @ p["whh"].T + p["bhh"]
    ig, fg, gg, og = jnp.split(gates, 4, axis=-1)
    c_new = jax.nn.sigmoid(fg) * c0 + jax.nn.sigmoid(ig) * jnp.tanh(gg)
    h_new = jax.nn.sigmoid(og) * jnp.tanh(c_new)
    act_emb = mlp2(h_new, p["w3a"], p["b3a"], p["w3b"], p["b3b"])
    graph_emb = mlp2(nei_pre, p["w2a"], p["b2a"], p["w2b"], p["b2b"])
    values = jnp.einsum("bke,be->bk", graph_emb, act_emb) / math.sqrt(EMBED)
    return values, h_new, c_new


# ---------------------------------- main ---------------------------------------
if __name__ == "__main__":
    key = jax.random.PRNGKey(0)
    k_emb, k_h, k_c, k_par, k_act = jax.random.split(key, 5)

    params = make_params(k_par)
    node_pre_embedding = jax.random.normal(k_emb, (N_NODES, PRE_DIM), jnp.float32)
    w_all = pack_params(params, node_pre_embedding)

    # rollout of T forward() calls; synthetic fixed-degree graph: neighbors of
    # node n are (n+1..n+K) mod N_NODES.
    T = 4
    actions_seq = jax.random.randint(k_act, (T, B), 0, N_NODES, dtype=jnp.int32)
    steps_seq = (jnp.arange(T, dtype=jnp.float32)[:, None]
                 + jnp.array([2.0, 5.0], jnp.float32)[None, :])          # [T, B]
    nei_seq = (actions_seq[:, :, None] + 1
               + jnp.arange(K, dtype=jnp.int32)[None, None, :]) % N_NODES  # [T,B,K]
    h0 = jax.random.normal(k_h, (B, LSTM_H), jnp.float32)
    c0 = jax.random.normal(k_c, (B, LSTM_H), jnp.float32)

    values, h_all, c_all = q1_rollout_pallas(
        actions_seq, nei_seq, steps_seq, h0, c0, w_all)
    jax.block_until_ready((values, h_all, c_all))

    # reference: T per-step pure-JAX forwards with h/c threaded
    v_ref_l, h_ref_l, c_ref_l = [], [], []
    h, c = h0, c0
    for t in range(T):
        sf = (steps_seq[t] * INV_DRS)[:, None]                           # [B, 1]
        act_pre = jnp.concatenate([node_pre_embedding[actions_seq[t]], sf], -1)
        nei_pre = jnp.concatenate(
            [node_pre_embedding[nei_seq[t]],
             jnp.broadcast_to(sf[:, None, :], (B, K, 1))], -1)
        v, h, c = q1_forward_ref(act_pre, nei_pre, h, c, params)
        v_ref_l.append(v); h_ref_l.append(h); c_ref_l.append(c)
    v_ref = jnp.stack(v_ref_l)
    h_ref = jnp.stack(h_ref_l)
    c_ref = jnp.stack(c_ref_l)

    assert jnp.allclose(values, v_ref, atol=1e-4, rtol=1e-4)
    assert jnp.allclose(h_all, h_ref, atol=1e-4, rtol=1e-4)
    assert jnp.allclose(c_all, c_ref, atol=1e-4, rtol=1e-4)

    print("KERNEL_OK")
</pallas_src>

<mosaic_0001>
module attributes {stable_mosaic.version = 11 : i64} {
  func.func @q1_kernel(%arg0: i32, %arg1: memref<1x24x2xf32, #tpu.memory_space<vmem>>, %arg2: memref<2x64xf32, #tpu.memory_space<vmem>>, %arg3: memref<168x128xf32, #tpu.memory_space<vmem>>, %arg4: memref<1x2x128xf32, #tpu.memory_space<vmem>>, %arg5: memref<2x64xf32, #tpu.memory_space<vmem>>) attributes {dimension_semantics = [#tpu.dimension_semantics<arbitrary>], iteration_bounds = array<i64: 4>, scalar_prefetch = 0 : i64, scratch_operands = 1 : i64, tpu.core_type = #tpu.core_type<tc>, window_params = [{transform_indices = @transform_0, window_bounds = array<i64: 1, 24, 2>}, {pipeline_mode = #tpu.pipeline_mode<synchronous>, transform_indices = @transform_1, window_bounds = array<i64: 2, 64>}, {pipeline_mode = #tpu.pipeline_mode<synchronous>, transform_indices = @transform_2, window_bounds = array<i64: 168, 128>}, {transform_indices = @transform_3, window_bounds = array<i64: 1, 2, 128>}]} {
    %c0_i32 = arith.constant 0 : i32
    %0 = arith.cmpi eq, %arg0, %c0_i32 : i32
    %1 = arith.extui %0 : i1 to i32
    %c0_i32_0 = arith.constant 0 : i32
    %2 = arith.cmpi ne, %1, %c0_i32_0 : i32
    scf.if %2 {
      %c0_38 = arith.constant 0 : index
      %c0_39 = arith.constant 0 : index
      %83 = vector.load %arg2[%c0_38, %c0_39] : memref<2x64xf32, #tpu.memory_space<vmem>>, vector<2x64xf32>
      %c0_40 = arith.constant 0 : index
      %c0_41 = arith.constant 0 : index
      %84 = vector.load %arg5[%c0_40, %c0_41] : memref<2x64xf32, #tpu.memory_space<vmem>>, vector<2x64xf32>
      tpu.vector_store %arg5[%c0_40, %c0_41], %83 {strides = array<i32>} : memref<2x64xf32, #tpu.memory_space<vmem>>, vector<2x64xf32>,
    } else {
    }
    %c0 = arith.constant 0 : index
    %c0_1 = arith.constant 0 : index
    %c0_2 = arith.constant 0 : index
    %3 = vector.load %arg1[%c0, %c0_1, %c0_2] : memref<1x24x2xf32, #tpu.memory_space<vmem>>, vector<1x24x2xf32>
    %4 = vector.shape_cast %3 : vector<1x24x2xf32> to vector<24x2xf32>
    %5 = vector.extract_strided_slice %4 {offsets = [0, 0], sizes = [24, 1], strides = [1, 1]} : vector<24x2xf32> to vector<24x1xf32>
    %6 = vector.extract_strided_slice %4 {offsets = [0, 1], sizes = [24, 1], strides = [1, 1]} : vector<24x2xf32> to vector<24x1xf32>
    %7 = tpu.iota {dimensions = array<i32: 1>} : vector<24x32xi32>
    %8 = arith.sitofp %7 : vector<24x32xi32> to vector<24x32xf32>
    %9 = vector.broadcast %5 : vector<24x1xf32> to vector<24x32xf32>
    %10 = arith.cmpf oeq, %8, %9 : vector<24x32xf32>
    %11 = arith.extui %10 : vector<24x32xi1> to vector<24x32xi32>
    %12 = arith.sitofp %11 : vector<24x32xi32> to vector<24x32xf32>
    %c16_i32 = arith.constant 16 : i32
    %13 = vector.broadcast %c16_i32 : i32 to vector<24x32xi32>
    %14 = arith.cmpi eq, %7, %13 : vector<24x32xi32>
    %15 = arith.extui %14 : vector<24x32xi1> to vector<24x32xi32>
    %16 = arith.sitofp %15 : vector<24x32xi32> to vector<24x32xf32>
    %17 = vector.broadcast %6 : vector<24x1xf32> to vector<24x32xf32>
    %18 = arith.mulf %16, %17 : vector<24x32xf32>
    %19 = arith.addf %12, %18 : vector<24x32xf32>
    %c0_3 = arith.constant 0 : index
    %c0_4 = arith.constant 0 : index
    %20 = vector.load %arg3[%c0_3, %c0_4] : memref<168x128xf32, #tpu.memory_space<vmem>>, vector<32x64xf32>
    %cst = arith.constant dense<0.000000e+00> : vector<24x64xf32>
    %21 = tpu.matmul %19, %20, %cst {dimension_numbers = #tpu.dot_dimension_numbers<[1], [0], [0], [1], [0, 0, 1, 1], [], []>} : vector<24x32xf32>, vector<32x64xf32>, vector<24x64xf32> -> vector<24x64xf32>
    %c160 = arith.constant 160 : index
    %c0_5 = arith.constant 0 : index
    %22 = vector.load %arg3[%c160, %c0_5] : memref<168x128xf32, #tpu.memory_space<vmem>>, vector<1x64xf32>
    %23 = vector.broadcast %22 : vector<1x64xf32> to vector<24x64xf32>
    %24 = arith.addf %21, %23 : vector<24x64xf32>
    %cst_6 = arith.constant 0.000000e+00 : f32
    %25 = vector.broadcast %cst_6 : f32 to vector<24x64xf32>
    %26 = arith.maximumf %24, %25 : vector<24x64xf32>
    %c96 = arith.constant 96 : index
    %c0_7 = arith.constant 0 : index
    %27 = vector.load %arg3[%c96, %c0_7] : memref<168x128xf32, #tpu.memory_space<vmem>>, vector<64x64xf32>
    %cst_8 = arith.constant dense<0.000000e+00> : vector<24x64xf32>
    %28 = tpu.matmul %26, %27, %cst_8 {dimension_numbers = #tpu.dot_dimension_numbers<[1], [0], [0], [1], [0, 0, 1, 1], [], []>} : vector<24x64xf32>, vector<64x64xf32>, vector<24x64xf32> -> vector<24x64xf32>
    %c161 = arith.constant 161 : index
    %c0_9 = arith.constant 0 : index
    %29 = vector.load %arg3[%c161, %c0_9] : memref<168x128xf32, #tpu.memory_space<vmem>>, vector<1x64xf32>
    %30 = vector.broadcast %29 : vector<1x64xf32> to vector<24x64xf32>
    %31 = arith.addf %28, %30 : vector<24x64xf32>
    %32 = vector.extract_strided_slice %31 {offsets = [0, 0], sizes = [2, 32], strides = [1, 1]} : vector<24x64xf32> to vector<2x32xf32>
    %33 = vector.extract_strided_slice %31 {offsets = [8, 32], sizes = [16, 32], strides = [1, 1]} : vector<24x64xf32> to vector<16x32xf32>
    %c0_10 = arith.constant 0 : index
    %c0_11 = arith.constant 0 : index
    %34 = vector.load %arg5[%c0_10, %c0_11] : memref<2x64xf32, #tpu.memory_space<vmem>>, vector<2x32xf32>
    %c0_12 = arith.constant 0 : index
    %c32 = arith.constant 32 : index
    %35 = vector.load %arg5[%c0_12, %c32] : memref<2x64xf32, #tpu.memory_space<vmem>>, vector<2x32xf32>
    %c32_13 = arith.constant 32 : index
    %c0_14 = arith.constant 0 : index
    %36 = vector.load %arg3[%c32_13, %c0_14] : memref<168x128xf32, #tpu.memory_space<vmem>>, vector<32x128xf32>
    %cst_15 = arith.constant dense<0.000000e+00> : vector<2x128xf32>
    %37 = tpu.matmul %32, %36, %cst_15 {dimension_numbers = #tpu.dot_dimension_numbers<[1], [0], [0], [1], [0, 0, 1, 1], [], []>} : vector<2x32xf32>, vector<32x128xf32>, vector<2x128xf32> -> vector<2x128xf32>
    %c64 = arith.constant 64 : index
    %c0_16 = arith.constant 0 : index
    %38 = vector.load %arg3[%c64, %c0_16] : memref<168x128xf32, #tpu.memory_space<vmem>>, vector<32x128xf32>
    %cst_17 = arith.constant dense<0.000000e+00> : vector<2x128xf32>
    %39 = tpu.matmul %34, %38, %cst_17 {dimension_numbers = #tpu.dot_dimension_numbers<[1], [0], [0], [1], [0, 0, 1, 1], [], []>} : vector<2x32xf32>, vector<32x128xf32>, vector<2x128xf32> -> vector<2x128xf32>
    %40 = arith.addf %37, %39 : vector<2x128xf32>
    %c162 = arith.constant 162 : index
    %c0_18 = arith.constant 0 : index
    %41 = vector.load %arg3[%c162, %c0_18] : memref<168x128xf32, #tpu.memory_space<vmem>>, vector<1x128xf32>
    %42 = vector.broadcast %41 : vector<1x128xf32> to vector<2x128xf32>
    %43 = arith.addf %40, %42 : vector<2x128xf32>
    %44 = arith.negf %43 : vector<2x128xf32>
    %45 = math.exp %44 : vector<2x128xf32>
    %cst_19 = arith.constant 1.000000e+00 : f32
    %46 = vector.broadcast %cst_19 : f32 to vector<2x128xf32>
    %47 = arith.addf %46, %45 : vector<2x128xf32>
    %48 = arith.divf %46, %47 : vector<2x128xf32>
    %49 = math.tanh %43 : vector<2x128xf32>
    %50 = vector.extract_strided_slice %48 {offsets = [0, 0], sizes = [2, 32], strides = [1, 1]} : vector<2x128xf32> to vector<2x32xf32>
    %51 = vector.extract_strided_slice %48 {offsets = [0, 32], sizes = [2, 32], strides = [1, 1]} : vector<2x128xf32> to vector<2x32xf32>
    %52 = vector.extract_strided_slice %49 {offsets = [0, 64], sizes = [2, 32], strides = [1, 1]} : vector<2x128xf32> to vector<2x32xf32>
    %53 = vector.extract_strided_slice %48 {offsets = [0, 96], sizes = [2, 32], strides = [1, 1]} : vector<2x128xf32> to vector<2x32xf32>
    %54 = arith.mulf %51, %35 : vector<2x32xf32>
    %55 = arith.mulf %50, %52 : vector<2x32xf32>
    %56 = arith.addf %54, %55 : vector<2x32xf32>
    %57 = math.tanh %56 : vector<2x32xf32>
    %58 = arith.mulf %53, %57 : vector<2x32xf32>
    %59 = tpu.concatenate %58, %56 in 1 : vector<2x32xf32>, vector<2x32xf32> -> vector<2x64xf32>
    %c0_20 = arith.constant 0 : index
    %c0_21 = arith.constant 0 : index
    %60 = vector.load %arg5[%c0_20, %c0_21] : memref<2x64xf32, #tpu.memory_space<vmem>>, vector<2x64xf32>
    tpu.vector_store %arg5[%c0_20, %c0_21], %59 {strides = array<i32>} : memref<2x64xf32, #tpu.memory_space<vmem>>, vector<2x64xf32>,
    %c0_22 = arith.constant 0 : index
    %c64_23 = arith.constant 64 : index
    %61 = vector.load %arg3[%c0_22, %c64_23] : memref<168x128xf32, #tpu.memory_space<vmem>>, vector<32x32xf32>
    %cst_24 = arith.constant dense<0.000000e+00> : vector<2x32xf32>
    %62 = tpu.matmul %58, %61, %cst_24 {dimension_numbers = #tpu.dot_dimension_numbers<[1], [0], [0], [1], [0, 0, 1, 1], [], []>} : vector<2x32xf32>, vector<32x32xf32>, vector<2x32xf32> -> vector<2x32xf32>
    %c163 = arith.constant 163 : index
    %c0_25 = arith.constant 0 : index
    %63 = vector.load %arg3[%c163, %c0_25] : memref<168x128xf32, #tpu.memory_space<vmem>>, vector<1x32xf32>
    %64 = vector.broadcast %63 : vector<1x32xf32> to vector<2x32xf32>
    %65 = arith.addf %62, %64 : vector<2x32xf32>
    %cst_26 = arith.constant 0.000000e+00 : f32
    %66 = vector.broadcast %cst_26 : f32 to vector<2x32xf32>
    %67 = arith.maximumf %65, %66 : vector<2x32xf32>
    %c0_27 = arith.constant 0 : index
    %c96_28 = arith.constant 96 : index
    %68 = vector.load %arg3[%c0_27, %c96_28] : memref<168x128xf32, #tpu.memory_space<vmem>>, vector<32x32xf32>
    %cst_29 = arith.constant dense<0.000000e+00> : vector<2x32xf32>
    %69 = tpu.matmul %67, %68, %cst_29 {dimension_numbers = #tpu.dot_dimension_numbers<[1], [0], [0], [1], [0, 0, 1, 1], [], []>} : vector<2x32xf32>, vector<32x32xf32>, vector<2x32xf32> -> vector<2x32xf32>
    %c164 = arith.constant 164 : index
    %c0_30 = arith.constant 0 : index
    %70 = vector.load %arg3[%c164, %c0_30] : memref<168x128xf32, #tpu.memory_space<vmem>>, vector<1x32xf32>
    %71 = vector.broadcast %70 : vector<1x32xf32> to vector<2x32xf32>
    %72 = arith.addf %69, %71 : vector<2x32xf32>
    %cst_31 = arith.constant dense<0.000000e+00> : vector<2x16xf32>
    %73 = tpu.matmul %72, %33, %cst_31 {dimension_numbers = #tpu.dot_dimension_numbers<[1], [1], [0], [0], [0, 0, 1, 0], [], []>} : vector<2x32xf32>, vector<16x32xf32>, vector<2x16xf32> -> vector<2x16xf32>
    %cst_32 = arith.constant 0.176776692 : f32
    %74 = vector.broadcast %cst_32 : f32 to vector<2x16xf32>
    %75 = arith.mulf %73, %74 : vector<2x16xf32>
    %cst_33 = arith.constant 0.000000e+00 : f32
    %76 = vector.broadcast %cst_33 : f32 to vector<2x16xf32>
    %77 = tpu.concatenate %75, %76 in 1 : vector<2x16xf32>, vector<2x16xf32> -> vector<2x32xf32>
    %cst_34 = arith.constant 0.000000e+00 : f32
    %78 = vector.broadcast %cst_34 : f32 to vector<2x32xf32>
    %79 = tpu.concatenate %77, %58, %56, %78 in 1 : vector<2x32xf32>, vector<2x32xf32>, vector<2x32xf32>, vector<2x32xf32> -> vector<2x128xf32>
    %c0_35 = arith.constant 0 : index
    %c0_36 = arith.constant 0 : index
    %c0_37 = arith.constant 0 : index
    %80 = vector.load %arg4[%c0_35, %c0_36, %c0_37] : memref<1x2x128xf32, #tpu.memory_space<vmem>>, vector<1x2x128xf32>
    %81 = vector.shape_cast %80 : vector<1x2x128xf32> to vector<2x128xf32>
    %82 = vector.shape_cast %79 : vector<2x128xf32> to vector<1x2x128xf32>
    tpu.vector_store %arg4[%c0_35, %c0_36, %c0_37], %82 {strides = array<i32>} : memref<1x2x128xf32, #tpu.memory_space<vmem>>, vector<1x2x128xf32>,
    return
  }
  func.func @transform_0(%arg0: i32) -> (i32, i32, i32) {
    %c0_i32 = arith.constant 0 : i32
    %c0_i32_0 = arith.constant 0 : i32
    %c0_i32_1 = arith.constant 0 : i32
    return %arg0, %c0_i32, %c0_i32_0 : i32, i32, i32
  }
  func.func @transform_1(%arg0: i32) -> (i32, i32) {
    %c0_i32 = arith.constant 0 : i32
    %c0_i32_0 = arith.constant 0 : i32
    %c0_i32_1 = arith.constant 0 : i32
    return %c0_i32, %c0_i32_0 : i32, i32
  }
  func.func @transform_2(%arg0: i32) -> (i32, i32) {
    %c0_i32 = arith.constant 0 : i32
    %c0_i32_0 = arith.constant 0 : i32
    %c0_i32_1 = arith.constant 0 : i32
    return %c0_i32, %c0_i32_0 : i32, i32
  }
  func.func @transform_3(%arg0: i32) -> (i32, i32, i32) {
    %c0_i32 = arith.constant 0 : i32
    %c0_i32_0 = arith.constant 0 : i32
    %c0_i32_1 = arith.constant 0 : i32
    return %arg0, %c0_i32, %c0_i32_0 : i32, i32, i32
  }
}

</mosaic_0001>

<bundles_post_ra>
// kernel: q1_rollout_pallas.1
= control target key start
LH: loop header
LB: loop body
LE: loop exit
PB: predicated region body
PF: predicated region fallthrough
CT: control target
= control target key end

     0   :  { %8 = vsyncpa [#allocation4], 0  ;;  %s799_s12 = smov 0   ;;  %s863_s0 = inlined_call_operand.vmem [shape: f32[4,24,2], index: 0, kind: input, shape index: {}]   ;;  %s864_s1 = inlined_call_operand.vmem [shape: f32[2,64], index: 1, kind: input, shape index: {}]   ;;  %s865_s2 = inlined_call_operand.hbm [shape: f32[168,128], index: 2, kind: input, shape index: {}]   ;;  %s866_s3 = inlined_call_operand.vmem [shape: f32[4,2,128], index: 3, kind: output, shape index: {}]  }
   0x1 LB: > { %s127_s15 = sshll.u32 %s865_s2, 4  ;;  %s632_s16 = sadd.s32 4294967295, %s768_s12   ;;  %s768_s12 = sphi %s799_s12, %s14_s12   ;;  %s128_s15 = int_to_ptr.hbm [resolvable:$true] %s127_s15 }
   0x2   : > { %p634_p0 = scmp.ge.s32.totalorder %s768_s12, 1  ;;  %p113_p1 = scmp.lt.s32.totalorder %s768_s12, 5 }
   0x3   : > { %p635_p2 = scmp.ne.s32.totalorder %s632_s16, 0  ;;  %p671_p3 = scmp.eq.s32.totalorder %s632_s16, 0 }
   0x4   : > { %p114_p4 = pnand %p634_p0, %p113_p1  ;;  %s770_s17 = smov [#allocation3]  }
   0x5   : > { %s129_s18 = sshll.u32 %s770_s17, 4  ;;  %s771_s19 = smov 128   ;;  %s130_s18 = int_to_ptr.vmem [resolvable:$true] %s129_s18 }
   0x6   : > { %p667_p5 = pneg %p114_p4  ;;  %s772_s20 = smov 8  }
   0x7   : > { %153 = sbr.rel (%p114_p4) target bundleno = 1436 (0x59c), region = 32 }
   0x8   : > { %p668_p6 = pnand %p671_p3, %p667_p5 }
   0xa   : > { %670 = dma.hbm_to_vmem [thread:$0]  (!%p668_p6), %s128_s15, 2688, %s130_s18, [#allocation4], %s771_s19, %s771_s19, %s772_s20  }
   0xc   : > { %763 = dma.done.wait (%p671_p3), [#allocation4], 2688  }
   0xd   : > { %765 = vsyncadd (%p671_p3), [#allocation4], 4294964608  ;;  %p177_p7 = scmp.lt.s32.totalorder %s632_s16, 3 }
   0xf   : > { %s178_s21 = scalar_select %p177_p7, %s632_s16, 3 }
  0x10   : > { %189 = sbr.rel (%p635_p2) target bundleno = 23 (0x17), region = 40 }
  0x11   : > { %s662_s22 = smul.u32 24, %s178_s21  ;;  %s640_s23 = sshll.u32 %s178_s21, 1 }
  0x12   : > { %s813_s26 = scalar_lea.vmem %s866_s3, %s640_s23 }
  0x13   : > { %s181_s29 = scalar_lea.vmem %s863_s0, %s662_s22 }
  0x15   : > { %v190_v0 = vld [vmem:[%s864_s1] sm:$0x3]  ;;  %vm191_vm0 = vcmask 517120  }
  0x16   : > { %192 = vst.msk [vmem:[#allocation2] sm:$0x3] %vm191_vm0, %v190_v0 }
  0x17 PF: > { %v193_v1 = vld [vmem:[%s181_s29] sm:$0xff]  ;;  %v194_v2 = vld [vmem:[%s181_s29 + $0x8] sm:$0xff]  ;;  %v773_v3 = vmov 0   ;;  %v774_v4 = vmov 1   ;;  %v195_v5 = vld [vmem:[%s181_s29 + $0x10] sm:$0xff]  ;;  %v196_v10 = vlaneseq  ;;  %v775_v20 = vmov 0.0  }
  0x18   : > { %690 = vset.pattern.permute.xlu0 %v773_v3  ;;  %692 = vset.pattern.permute.xlu2 %v773_v3  ;;  %v822_v6 = vld [vmem:[#allocation3 + $0x18] sm:$0xff]  ;;  %v824_v7 = vld [vmem:[#allocation3 + $0x10] sm:$0xff]  ;;  %v828_v8 = vld [vmem:[#allocation3 + $0x8] sm:$0xff]  ;;  %vm250_vm3 = vcmask 261120   ;;  %vm299_vm6 = vcmask 523264   ;;  %s776_s5 = smov 64  }
  0x19   : > { %201 = vperm.xlu0 %690, %v193_v1   ;;  %206 = vperm.xlu2 %692, %v194_v2   ;;  %v831_v9 = vld [vmem:[#allocation3] sm:$0xff]  ;;  %v296_v11 = vld [vmem:[#allocation3 + $0x98] sm:$0xff]  ;;  %v295_v12 = vld [vmem:[#allocation3 + $0x90] sm:$0xff]  ;;  %v197_v14 = vand.u32 127, %v196_v10  ;;  %s777_s6 = smov 32   ;;  %s778_s7 = smov 96  }
  0x1a   : > { %272 = vmatpush.msra.mxu0 %v822_v6  ;;  %317 = vmatpush.msra.mxu1 %v296_v11  ;;  %v294_v16 = vld [vmem:[#allocation3 + $0x88] sm:$0xff]  ;;  %v293_v17 = vld [vmem:[#allocation3 + $0x80] sm:$0xff]  ;;  %v292_v19 = vld [vmem:[#allocation3 + $0x78] sm:$0xff]  ;;  %vm435_vm11 = vcmask 517120   ;;  %vm553_vm12 = vcmask 130048   ;;  %vm564_vm13 = vcmask 785408  }
  0x1b   : > { %v198_v18 = vcvt.s32.f32 %v197_v14  ;;  %vm223_vm1 = vcmp.eq.s32.totalorder %v197_v14, 16  ;;  %v291_v35 = vld [vmem:[#allocation3 + $0x70] sm:$0xff]  ;;  %v290_v36 = vld [vmem:[#allocation3 + $0x68] sm:$0xff]  ;;  %v289_v37 = vld [vmem:[#allocation3 + $0x60] sm:$0xff] }
  0x1c   : > { %273 = vmatpush.msra.mxu0 %v824_v7  ;;  %318 = vmatpush.msra.mxu1 %v295_v12  ;;  %v645_v21 = vsel %vm223_vm1, 1.0, %v775_v20  ;;  %v343_v38 = vld [vmem:[#allocation3 + $0x58] sm:$0xff]  ;;  %v342_v40 = vld [vmem:[#allocation3 + $0x50] sm:$0xff]  ;;  %v715_v42 = vld [vmem:[#allocation3 + $0xa0] ss:$0 sm:$0xff] }
  0x1d   : > { %v339_v39 = vld [vmem:[#allocation3 + $0x38] sm:$0xff]  ;;  %359 = vmatpush.msra.mxu2 %v343_v38  ;;  %v338_v41 = vld [vmem:[#allocation3 + $0x30] sm:$0xff]  ;;  %v341_v52 = vld [vmem:[#allocation3 + $0x48] sm:$0xff] }
  0x1e   : > { %274 = vmatpush.msra.mxu0 %v828_v8  ;;  %319 = vmatpush.msra.mxu1 %v294_v16  ;;  %v337_v53 = vld [vmem:[#allocation3 + $0x28] sm:$0xff]  ;;  %v340_v54 = vld [vmem:[#allocation3 + $0x40] sm:$0xff]  ;;  %v335_v56 = vld [vmem:[#allocation2] sm:$0x3] }
  0x1f   : > { %382 = vmatpush.msra.mxu3 %v339_v39  ;;  %360 = vmatpush.msra.mxu2 %v342_v40  ;;  %v336_v55 = vld [vmem:[#allocation3 + $0x20] sm:$0xff] }
  0x20   : > { %275 = vmatpush.msra.mxu0 %v831_v9  ;;  %320 = vmatpush.msra.mxu1 %v293_v17  ;;  %v716_v57 = vld [vmem:[#allocation3 + $0xa1] ss:$0 sm:$0xff]  ;;  %v717_v61 = vld [vmem:[#allocation3 + $0xa2] ss:$0 sm:$0xff] }
  0x21   : > { %691 = vset.pattern.permute.xlu0 %v774_v4  ;;  %693 = vset.pattern.permute.xlu2 %v774_v4 }
  0x22   : > { %227 = vperm.xlu0 %691, %v193_v1   ;;  %231 = vperm.xlu2 %693, %v194_v2  }
  0x23   : > { %321 = vmatpush.msra.mxu1 %v292_v19  ;;  %383 = vmatpush.msra.mxu3 %v338_v41 }
  0x24   : > { %361 = vmatpush.msra.mxu2 %v341_v52 }
  0x25   : > { %322 = vmatpush.msra.mxu1 %v291_v35  ;;  %384 = vmatpush.msra.mxu3 %v337_v53 }
  0x26   : > { %362 = vmatpush.msra.mxu2 %v340_v54 }
  0x27   : > { %323 = vmatpush.msra.mxu1 %v290_v36  ;;  %385 = vmatpush.msra.mxu3 %v336_v55 }
  0x28   : > { %652 = vmatmul.msk.f32.vlgmr.msra.gmra.mxu2 %vm250_vm3, %v335_v56 }
  0x29   : > { %324 = vmatpush.msra.mxu1 %v289_v37 }
  0x2a   : > { %235 = vperm.xlu0 %691, %v195_v5   ;;  %694 = vset.pattern.permute.xlu2 %v773_v3 }
  0x2b   : > { %211 = vperm.xlu2 %694, %v195_v5  }
  0x73   : > { %v207_v13 = vpop.permute.xlu2 %206 }
  0x74   : > { %vm215_vm4 = vcmp.eq.f32.partialorder %v198_v18, %v207_v13 }
  0x75   : > { %v643_v28 = vsel %vm215_vm4, 1.0, %v775_v20 }
  0x7c   : > { %v232_v22 = vpop.permute.xlu2 %231 }
  0x7d   : > { %v239_v27 = vmul.f32 %v645_v21, %v232_v22 }
  0x7f   : > { %v242_v29 = vadd.f32 %v643_v28, %v239_v27 }
  0x85   : > { %v212_v30 = vpop.permute.xlu2 %211 }
  0x86   : > { %vm216_vm5 = vcmp.eq.f32.partialorder %v198_v18, %v212_v30 }
  0x87   : > { %v644_v33 = vsel %vm216_vm5, 1.0, %v775_v20 }
  0x8b   : > { %v202_v15 = vpop.permute.xlu0 %201 }
  0x8c   : > { %vm214_vm2 = vcmp.eq.f32.partialorder %v198_v18, %v202_v15 }
  0x8d   : > { %v642_v25 = vsel %vm214_vm2, 1.0, %v775_v20 }
  0x94   : > { %v228_v23 = vpop.permute.xlu0 %227 }
  0x95   : > { %v238_v24 = vmul.f32 %v645_v21, %v228_v23 }
  0x97   : > { %v241_v26 = vadd.f32 %v642_v25, %v238_v24 }
  0x99   : > { %646 = vmatmul.msk.f32.vlgmr.msra.gmra.mxu0 %vm250_vm3, %v241_v26  ;;  %v695_v26 = vpack.i.bf16 %v824_v7, %v822_v6 }
  0x9c   : > { %v236_v31 = vpop.permute.xlu0 %235 }
  0x9d   : > { %v240_v32 = vmul.f32 %v645_v21, %v236_v31  ;;  %v700_v21 = vpack.i.bf16 %v831_v9, %v828_v8 }
  0x9f   : > { %v243_v34 = vadd.f32 %v644_v33, %v240_v32  ;;  %701 = vrot.lane.b32.xlu2 %v700_v21, %s776_s5 }
  0xa1   : > { %647 = vmatmul.msk.f32.gmra.mxu0 %vm250_vm3, %v242_v29 }
  0xa7   : > { %711 = vrot.lane.b32.xlu2 %v700_v21, %s777_s6 }
  0xa9   : > { %648 = vmatmul.msk.f32.gmra.mxu0 %vm250_vm3, %v243_v34 }
  0xab   : > { %v364_v60 = vpop.f32.mrf.mxu2 }
  0xf9   : > { %v702_v6 = vpop.permute.xlu2 %701 }
  0xfa   : > { %v703_v7 = vunpack.i.l.bf16 %v702_v6  ;;  %v704_v34 = vunpack.i.h.bf16 %v702_v6 }
 0x101   : > { %v712_v38 = vpop.permute.xlu2 %711 }
 0x102   : > { %v713_v39 = vunpack.i.l.bf16 %v712_v38 }
 0x116   : > { %v277_v43 = vpop.f32.mrf.mxu0 }
 0x117   : > { %v278_v44 = vadd.f32 %v715_v42, %v277_v43  ;;  %v714_v43 = vunpack.i.h.bf16 %v712_v38 }
 0x119   : > { %v286_v45 = vmax.f32 %v278_v44, 0.0 }
 0x11b   : > { %649 = vmatmul.msk.f32.vlgmr.msra.gmra.mxu1 %vm299_vm6, %v286_v45  ;;  %v718_v45 = vld [vmem:[#allocation3 + $0xa3] ss:$0 sm:$0xff] }
 0x11e   : > { %v280_v46 = vpop.f32.mrf.mxu0 }
 0x11f   : > { %v281_v47 = vadd.f32 %v715_v42, %v280_v46 }
 0x121   : > { %v287_v48 = vmax.f32 %v281_v47, 0.0 }
 0x123   : > { %650 = vmatmul.msk.f32.gmra.mxu1 %vm299_vm6, %v287_v48 }
 0x126   : > { %v283_v49 = vpop.f32.mrf.mxu0 }
 0x127   : > { %v284_v50 = vadd.f32 %v715_v42, %v283_v49  ;;  %v719_v49 = vld [vmem:[#allocation3 + $0xa4] ss:$0 sm:$0xff] }
 0x129   : > { %v288_v51 = vmax.f32 %v284_v50, 0.0 }
 0x12b   : > { %651 = vmatmul.msk.f32.gmra.mxu1 %vm299_vm6, %v288_v51 }
 0x198   : > { %v326_v58 = vpop.f32.mrf.mxu1 }
 0x199   : > { %v327_v59 = vadd.f32 %v716_v57, %v326_v58 }
 0x19b   : > { %653 = vmatmul.msk.f32.vlgmr.msra.gmra.mxu3 %vm250_vm3, %v327_v59 }
 0x1a0   : > { %v329_v27 = vpop.f32.mrf.mxu1 }
 0x1a1   : > { %v330_v28 = vadd.f32 %v716_v57, %v329_v27 }
 0x1a8   : > { %v332_v29 = vpop.f32.mrf.mxu1 }
 0x1a9   : > { %v333_v30 = vadd.f32 %v716_v57, %v332_v29 }
 0x21e   : > { %v387_v62 = vpop.f32.mrf.mxu3 }
 0x21f   : > { %v388_v63 = vadd.f32 %v387_v62, %v364_v60 }
 0x221   : > { %v392_v0 = vadd.f32 %v717_v61, %v388_v63 }
 0x223   : > { %720 = vtanh.f32 %v392_v0  ;;  %v654_v2 = vmul.f32 -1.442695, %v392_v0 }
 0x225   : > { %722 = vpow2.f32 %v654_v2 }
 0x229   : > { %v721_v1 = vpop.eup %720 }
 0x22a   : > { %415 = vrot.lane.b32.xlu1 %v721_v1, %s776_s5 }
 0x22b   : > { %v723_v3 = vpop.eup %722 }
 0x22c   : > { %v396_v4 = vadd.f32 1.0, %v723_v3 }
 0x22e   : > { %724 = vrcp.f32 %v396_v4  ;;  %v408_v14 = vand.u32 2147483648, %v396_v4  ;;  %vm402_vm8 = vweird.f32 %v396_v4  ;;  %v406_v15 = vand.u32 2147483647, %v396_v4 }
 0x230   : > { %v409_v17 = vor.u32 1.1754944e-38, %v408_v14  ;;  %vm407_vm10 = vcmp.eq.f32.partialorder %v406_v15, 8.507059e+37 }
 0x234   : > { %v725_v5 = vpop.eup %724 }
 0x235   : > { %v398_v10 = vmul.f32 %v725_v5, %v396_v4  ;;  %vm403_vm7 = vweird.f32 %v725_v5 }
 0x236   : > { %vm404_vm9 = vmor %vm402_vm8, %vm403_vm7 }
 0x237   : > { %v399_v11 = vsub.f32 1.0, %v398_v10 }
 0x239   : > { %v400_v12 = vmul.f32 %v725_v5, %v399_v11 }
 0x23b   : > { %v401_v13 = vadd.f32 %v725_v5, %v400_v12 }
 0x23d   : > { %v405_v16 = vsel %vm404_vm9, %v725_v5, %v401_v13 }
 0x23e   : > { %v410_v19 = vsel %vm407_vm10, %v409_v17, %v405_v16 }
 0x23f   : > { %v413_v22 = vmul.f32 %v410_v19, %v335_v56 }
 0x29c   : > { %v416_v18 = vpop.permute.xlu1 %415 }
 0x29d   : > { %v418_v20 = vmul.f32 %v416_v18, %v410_v19 }
 0x29f   : > { %420 = vrot.lane.b32.xlu1 %v418_v20, %s777_s6 }
 0x311   : > { %v421_v23 = vpop.permute.xlu1 %420 }
 0x312   : > { %v423_v24 = vadd.f32 %v421_v23, %v413_v22 }
 0x314   : > { %726 = vtanh.f32 %v423_v24 }
 0x31a   : > { %v727_v25 = vpop.eup %726 }
 0x31b   : > { %426 = vrot.lane.b32.xlu1 %v727_v25, %s776_s5 }
 0x323   : > { %696 = vrot.lane.b32.xlu1 %v695_v26, %s776_s5 }
 0x32b   : > { %706 = vrot.lane.b32.xlu1 %v695_v26, %s777_s6 }
 0x333   : > { %521 = vrot.lane.b32.xlu1 %v330_v28, %s778_s7 }
 0x38d   : > { %v427_v8 = vpop.permute.xlu1 %426 }
 0x38e   : > { %v429_v9 = vmul.f32 %v427_v8, %v410_v19 }
 0x390   : > { %555 = vrot.lane.b32.xlu2 %v429_v9, %s776_s5  ;;  %431 = vrot.lane.b32.xlu0 %v429_v9, %s777_s6 }
 0x395   : > { %v697_v31 = vpop.permute.xlu1 %696 }
 0x396   : > { %v698_v32 = vunpack.i.l.bf16 %v697_v31  ;;  %v699_v33 = vunpack.i.h.bf16 %v697_v31 }
 0x398   : > { %523 = vrot.lane.b32.xlu0 %v333_v30, %s778_s7  ;;  %473 = vmatpush.msrb.mxu2 %v698_v32 }
 0x39a   : > { %474 = vmatpush.msrb.mxu2 %v699_v33 }
 0x39c   : > { %475 = vmatpush.msrb.mxu2 %v703_v7 }
 0x39d   : > { %v707_v35 = vpop.permute.xlu1 %706 }
 0x39e   : > { %476 = vmatpush.msrb.mxu2 %v704_v34  ;;  %v708_v36 = vunpack.i.l.bf16 %v707_v35  ;;  %v709_v37 = vunpack.i.h.bf16 %v707_v35 }
 0x3a0   : > { %559 = vrot.lane.b32.xlu0 %v423_v24, %s777_s6  ;;  %511 = vmatpush.msrb.mxu3 %v708_v36 }
 0x3a2   : > { %512 = vmatpush.msrb.mxu3 %v709_v37 }
 0x3a4   : > { %513 = vmatpush.msrb.mxu3 %v713_v39 }
 0x3a5   : > { %v522_v44 = vpop.permute.xlu1 %521 }
 0x3a6   : > { %514 = vmatpush.msrb.mxu3 %v714_v43 }
 0x3ea   : > { %v556_v54 = vpop.permute.xlu2 %555 }
 0x402   : > { %v432_v40 = vpop.permute.xlu0 %431 }
 0x403   : > { %v434_v41 = vsel %vm250_vm3, %v432_v40, %v423_v24  ;;  %655 = vmatmul.msk.f32.vlgmr.msrb.gmra.mxu2 %vm250_vm3, %v432_v40 }
 0x404   : > { %436 = vst.msk [vmem:[#allocation2] sm:$0x3] %vm435_vm11, %v434_v41 }
 0x40a   : > { %v524_v42 = vpop.permute.xlu0 %523 }
 0x40b   : > { %657 = vmatpush.xpose.msk.msra.mxu2 %vm250_vm3, %v524_v42 }
 0x40f   : > { %658 = vmatpush.xpose.msk.msra.mxu2 %vm250_vm3, %v522_v44 }
 0x412   : > { %v560_v56 = vpop.permute.xlu0 %559 }
 0x486   : > { %v478_v46 = vpop.f32.mrf.mxu2 }
 0x487   : > { %v479_v47 = vadd.f32 %v718_v45, %v478_v46 }
 0x489   : > { %v481_v48 = vmax.f32 %v479_v47, 0.0 }
 0x48b   : > { %656 = vmatmul.msk.f32.vlgmr.msrb.gmra.mxu3 %vm250_vm3, %v481_v48 }
 0x50e   : > { %v516_v50 = vpop.f32.mrf.mxu3 }
 0x50f   : > { %v517_v51 = vadd.f32 %v719_v49, %v516_v50 }
 0x511   : > { %659 = vmatmul.msk.f32.vlgmr.msra.gmra.mxu2 %vm250_vm3, %v517_v51 }
 0x594   : > { %v549_v52 = vpop.f32.mrf.mxu2 }
 0x595   : > { %v552_v53 = vmul.f32 0.17677669, %v549_v52 }
 0x597   : > { %v554_v55 = vsel %vm553_vm12, %v552_v53, 0.0 }
 0x598   : > { %v562_v57 = vsel %vm250_vm3, %v554_v55, %v556_v54 }
 0x599   : > { %v563_v58 = vsel %vm299_vm6, %v562_v57, %v560_v56 }
 0x59a   : > { %v565_v59 = vsel %vm564_vm13, %v563_v58, 0.0 }
 0x59b   : > { %566 = vst [vmem:[%s813_s26] sm:$0x3] %v565_v59 }
 0x59c PF: > { %s14_s12 = sadd.s32 1, %s768_s12  }
 0x59d   : > { %p11_p8 = scmp.ge.s32.totalorder %s14_s12, 6  }
 0x59f   :  { %13 = sbr.rel (!%p11_p8) target bundleno = 1 (0x1), region = 71 }
 0x5a4   :  { %586 = vsyncpa [#allocation4], 1 }
 0x5a5   :  { %588 = vsyncpa [#allocation4 + $0x1], 1 }

</bundles_post_ra>
